<compile_context>
chip_gen: v6e
topology: v6e:2x2x1
jax: 0.10.0
libtpu: 0.0.40
codegen_flags: <defaults>
</compile_context>

<pallas_src>
import functools

import jax
import jax.numpy as jnp
from jax import lax
from jax.experimental import pallas as pl
from jax.experimental.pallas import tpu as pltpu


# --------------------------- fused Block kernel -----------------------------
def block_kernel(x_ref, m1_ref, b1_ref, m2_ref, b2_ref, o_ref, *, img_rows):
    """Fused conv1 + BN(folded) + ReLU + conv2 for a block of images.

    x_ref  : (R, W*Cin)      R = B_blk*H flat rows (image-major), channels fastest
    m1_ref : (3, W*Cin, W*F) banded weight matrices for conv1 (BN folded in)
    b1_ref : (1, W*F)        conv1 bias (BN folded), tiled over W, f32
    m2_ref : (3, W*F, W*F)   banded weight matrices for conv2
    b2_ref : (1, W*F)        conv2 bias, tiled over W, f32
    o_ref  : (R, W*F)        output rows, lane-dense, f32
    img_rows : H             static number of rows per image
    """
    f32 = jnp.float32
    R = x_ref.shape[0]
    WF = o_ref.shape[1]

    # Per-image vertical-boundary masks.  Rows are image-major, so row g of the
    # block is row (g % H) of its image.  The masks implement the vertical zero
    # padding AND kill cross-image / wraparound leakage of the sublane rolls.
    g = lax.broadcasted_iota(jnp.int32, (R, WF), 0)
    not_top = (g % img_rows) != 0                  # row h-1 exists within image
    not_bot = (g % img_rows) != (img_rows - 1)     # row h+1 exists within image

    def conv3x3(v, m_ref, b_ref):
        # out[g] = v[g-1] @ M0 + v[g] @ M1 + v[g+1] @ M2 + bias, with zeros at
        # the image's vertical edges.  The banded products are MXU matmuls; the
        # +-1 row shifts are XLU sublane rolls of the f32 products (free slot).
        y0 = jnp.dot(v, m_ref[0], preferred_element_type=f32)
        y1 = jnp.dot(v, m_ref[1], preferred_element_type=f32)
        y2 = jnp.dot(v, m_ref[2], preferred_element_type=f32)
        dn = jnp.where(not_top, pltpu.roll(y0, shift=1, axis=0), 0.0)      # y0[g-1]
        up = jnp.where(not_bot, pltpu.roll(y2, shift=R - 1, axis=0), 0.0)  # y2[g+1]
        return dn + y1 + up + b_ref[...]            # (R, W*F), f32

    h1 = jnp.maximum(conv3x3(x_ref[...], m1_ref, b1_ref), 0.0)   # conv1+BN+ReLU
    out = conv3x3(h1.astype(x_ref.dtype), m2_ref, b2_ref)        # conv2
    o_ref[...] = out.astype(o_ref.dtype)


# ------------------------------ wrapper --------------------------------------
def _band_matrices(w_hwio, W):
    """3x3 'same' conv (stride 1) as 3 banded matrices (W*C, W*F), one per tap row.

    M_k[wi*C + c, w*F + f] = w[k, wi - w + 1, c, f]  (zero outside the band,
    which also implements the horizontal zero-padding)."""
    KH, KW, C, F = w_hwio.shape
    mats = []
    for k in range(KH):
        m = jnp.zeros((W * C, W * F), w_hwio.dtype)
        for kw in range(KW):
            band = jnp.eye(W, k=1 - kw, dtype=w_hwio.dtype)   # wi = w + (kw-1)
            m = m + jnp.kron(band, w_hwio[k, kw])
        mats.append(m)
    return jnp.stack(mats)                                     # (3, W*C, W*F)


def _pick_batch_block(N, H):
    """Images per grid step: stream many rows per matmul (amortise MXU
    fill/drain and the ~0.35us/step grid overhead) while keeping >= 2 grid
    steps when that still yields a reasonable row count (v7x: 2-TC batch split
    + pipeline prefetch)."""
    divs = [d for d in range(1, N + 1) if N % d == 0 and (d * H) % 8 == 0]
    if not divs:
        return N                     # full-array block always layout-legal
    multi_step = [d for d in divs if N // d >= 2 and d * H <= 256]
    if multi_step and max(multi_step) * H >= 32:
        return max(multi_step)
    single_ok = [d for d in divs if d * H <= 256] or divs
    return max(single_ok)


def block_forward(x_nchw, p, *, compute_dtype=jnp.bfloat16, batch_block=None):
    """Block.forward (default flags), NCHW in / NCHW (f32) out.

    Weights are taken in PyTorch OIHW layout and transposed here.
    compute_dtype controls the MXU operand dtype (bf16 recommended on
    v5e/v6e/v7x); accumulation, bias, ReLU and the output stay f32."""
    N, Cin, H, W = x_nchw.shape
    w1 = jnp.transpose(p["w1"], (2, 3, 1, 0))        # OIHW -> HWIO (3,3,Cin,F)
    w2 = jnp.transpose(p["w2"], (2, 3, 1, 0))        # (3,3,F,F)
    F = w1.shape[-1]

    # Fold eval-mode BatchNorm into conv1 weights/bias.
    eps = 1e-5
    scale1 = p["bn1_gamma"] * lax.rsqrt(p["bn1_var"] + eps)
    shift1 = p["bn1_beta"] - p["bn1_mean"] * scale1
    w1f = w1 * scale1                                # broadcast over F
    b1f = p["b1"] * scale1 + shift1

    m1 = _band_matrices(w1f, W)                      # (3, W*Cin, W*F)
    m2 = _band_matrices(w2, W)                       # (3, W*F,   W*F)
    b1t = jnp.tile(b1f, W).reshape(1, W * F).astype(jnp.float32)
    b2t = jnp.tile(p["b2"], W).reshape(1, W * F).astype(jnp.float32)

    # NCHW -> (N*H, W*Cin): flat image-major rows, channels fastest.
    x2 = jnp.transpose(x_nchw, (0, 2, 3, 1)).reshape(N * H, W * Cin)

    cd = compute_dtype
    x2, m1, m2 = x2.astype(cd), m1.astype(cd), m2.astype(cd)

    bb = batch_block if batch_block is not None else _pick_batch_block(N, H)
    assert N % bb == 0, (N, bb)
    steps = N // bb
    rows = bb * H

    itemsize = jnp.dtype(cd).itemsize
    flops = 3 * 2 * N * H * ((W * Cin) * (W * F) + (W * F) * (W * F))
    bytes_accessed = ((N * H * W * Cin + 3 * (W * Cin + W * F) * (W * F)) * itemsize
                      + (2 * W * F + N * H * W * F) * 4)

    out = pl.pallas_call(
        functools.partial(block_kernel, img_rows=H),
        out_shape=jax.ShapeDtypeStruct((N * H, W * F), jnp.float32),
        grid_spec=pltpu.PrefetchScalarGridSpec(
            num_scalar_prefetch=0,
            grid=(steps,),
            in_specs=[
                pl.BlockSpec((rows, W * Cin), lambda n: (n, 0)),
                # Constant-index weight/bias blocks (fetched once, kept in VMEM).
                pl.BlockSpec((3, W * Cin, W * F), lambda n: (0, 0, 0)),
                pl.BlockSpec((1, W * F), lambda n: (0, 0)),
                pl.BlockSpec((3, W * F, W * F), lambda n: (0, 0, 0)),
                pl.BlockSpec((1, W * F), lambda n: (0, 0)),
            ],
            out_specs=pl.BlockSpec((rows, W * F), lambda n: (n, 0)),
        ),
        compiler_params=pltpu.CompilerParams(
            dimension_semantics=("parallel",)),
        cost_estimate=pl.CostEstimate(
            flops=flops, transcendentals=0, bytes_accessed=bytes_accessed),
    )(x2, m1, b1t, m2, b2t)

    # (N*H, W*F) -> (N, H, W, F) -> NCHW (kept f32 to match the torch module).
    return jnp.transpose(out.reshape(N, H, W, F), (0, 3, 1, 2))


# ---------------- pure-JAX reference (correctness check) ---------------------
def block_forward_ref(x, p):
    eps = 1e-5
    y = lax.conv_general_dilated(x, p["w1"], (1, 1), ((1, 1), (1, 1)),
                                 dimension_numbers=("NCHW", "OIHW", "NCHW"))
    y = y + p["b1"][None, :, None, None]
    scale = p["bn1_gamma"] / jnp.sqrt(p["bn1_var"] + eps)
    y = ((y - p["bn1_mean"][None, :, None, None]) * scale[None, :, None, None]
         + p["bn1_beta"][None, :, None, None])
    y = jnp.maximum(y, 0.0)
    y = lax.conv_general_dilated(y, p["w2"], (1, 1), ((1, 1), (1, 1)),
                                 dimension_numbers=("NCHW", "OIHW", "NCHW"))
    return y + p["b2"][None, :, None, None]


if __name__ == "__main__":
    # Block(in_channels=4, features=8) on small inputs.
    N, Cin, H, W, F = 2, 4, 16, 16, 8

    key = jax.random.PRNGKey(0)
    ks = jax.random.split(key, 10)
    x = jax.random.normal(ks[0], (N, Cin, H, W), jnp.float32)

    params = {
        # PyTorch OIHW conv weights (transposed to HWIO inside block_forward).
        "w1": jax.random.normal(ks[1], (F, Cin, 3, 3), jnp.float32) * 0.1,
        "b1": jax.random.normal(ks[2], (F,), jnp.float32) * 0.1,
        "bn1_gamma": jax.random.uniform(ks[3], (F,), jnp.float32, 0.5, 1.5),
        "bn1_beta": jax.random.normal(ks[4], (F,), jnp.float32) * 0.1,
        "bn1_mean": jax.random.normal(ks[5], (F,), jnp.float32) * 0.1,
        "bn1_var": jax.random.uniform(ks[6], (F,), jnp.float32, 0.5, 1.5),
        "w2": jax.random.normal(ks[7], (F, F, 3, 3), jnp.float32) * 0.1,
        "b2": jax.random.normal(ks[8], (F,), jnp.float32) * 0.1,
    }

    ref = jax.block_until_ready(block_forward_ref(x, params))

    # f32 MXU operands: tight check of the banded-matrix / roll formulation.
    out_f32 = jax.block_until_ready(
        jax.jit(functools.partial(block_forward, compute_dtype=jnp.float32))(x, params))
    assert out_f32.shape == (N, F, H, W), out_f32.shape
    err32 = float(jnp.max(jnp.abs(out_f32 - ref)))
    assert jnp.allclose(out_f32, ref, rtol=2e-4, atol=2e-4), err32

    # Default (bf16 MXU operands, f32 accumulation): looser tolerance.
    out_bf16 = jax.block_until_ready(jax.jit(block_forward)(x, params))
    assert out_bf16.shape == (N, F, H, W), out_bf16.shape
    err16 = float(jnp.max(jnp.abs(out_bf16 - ref)))
    assert jnp.allclose(out_bf16, ref, rtol=8e-2, atol=8e-2), err16

    print("KERNEL_OK")
</pallas_src>

<mosaic_0001>
module attributes {stable_mosaic.version = 11 : i64} {
  func.func @block_kernel(%arg0: i32, %arg1: memref<32x64xf32, #tpu.memory_space<vmem>>, %arg2: memref<3x64x128xf32, #tpu.memory_space<vmem>>, %arg3: memref<1x128xf32, #tpu.memory_space<vmem>>, %arg4: memref<3x128x128xf32, #tpu.memory_space<vmem>>, %arg5: memref<1x128xf32, #tpu.memory_space<vmem>>, %arg6: memref<32x128xf32, #tpu.memory_space<vmem>>) attributes {dimension_semantics = [#tpu.dimension_semantics<parallel>], iteration_bounds = array<i64: 1>, scalar_prefetch = 0 : i64, scratch_operands = 0 : i64, tpu.core_type = #tpu.core_type<tc>, window_params = [{transform_indices = @transform_0, window_bounds = array<i64: 32, 64>}, {pipeline_mode = #tpu.pipeline_mode<synchronous>, transform_indices = @transform_1, window_bounds = array<i64: 3, 64, 128>}, {pipeline_mode = #tpu.pipeline_mode<synchronous>, transform_indices = @transform_2, window_bounds = array<i64: 1, 128>}, {pipeline_mode = #tpu.pipeline_mode<synchronous>, transform_indices = @transform_3, window_bounds = array<i64: 3, 128, 128>}, {pipeline_mode = #tpu.pipeline_mode<synchronous>, transform_indices = @transform_4, window_bounds = array<i64: 1, 128>}, {transform_indices = @transform_5, window_bounds = array<i64: 32, 128>}]} {
    %0 = tpu.iota {dimensions = array<i32: 0>} : vector<32x128xi32>
    %c16_i32 = arith.constant 16 : i32
    %c0_i32 = arith.constant 0 : i32
    %1 = arith.cmpi eq, %c16_i32, %c0_i32 : i32
    %c1_i32 = arith.constant 1 : i32
    %2 = arith.select %1, %c1_i32, %c16_i32 : i32
    %3 = vector.broadcast %2 : i32 to vector<32x128xi32>
    %4 = arith.remsi %0, %3 : vector<32x128xi32>
    %c0_i32_0 = arith.constant 0 : i32
    %5 = vector.broadcast %c0_i32_0 : i32 to vector<32x128xi32>
    %6 = arith.cmpi ne, %4, %5 : vector<32x128xi32>
    %c0_i32_1 = arith.constant 0 : i32
    %7 = vector.broadcast %c0_i32_1 : i32 to vector<32x128xi32>
    %8 = arith.cmpi slt, %4, %7 : vector<32x128xi32>
    %c0_i32_2 = arith.constant 0 : i32
    %9 = arith.cmpi slt, %2, %c0_i32_2 : i32
    %10 = vector.broadcast %9 : i1 to vector<32x128xi1>
    %11 = vector.broadcast %10 : vector<32x128xi1> to vector<32x128xi1>
    %12 = arith.xori %8, %11 : vector<32x128xi1>
    %13 = arith.andi %12, %6 : vector<32x128xi1>
    %14 = vector.broadcast %2 : i32 to vector<32x128xi32>
    %15 = arith.addi %4, %14 : vector<32x128xi32>
    %16 = arith.select %13, %15, %4 : vector<32x128xi1>, vector<32x128xi32>
    %c0_i32_3 = arith.constant 0 : i32
    %17 = vector.broadcast %c0_i32_3 : i32 to vector<32x128xi32>
    %18 = arith.cmpi ne, %16, %17 : vector<32x128xi32>
    %c16_i32_4 = arith.constant 16 : i32
    %c0_i32_5 = arith.constant 0 : i32
    %19 = arith.cmpi eq, %c16_i32_4, %c0_i32_5 : i32
    %c1_i32_6 = arith.constant 1 : i32
    %20 = arith.select %19, %c1_i32_6, %c16_i32_4 : i32
    %21 = vector.broadcast %20 : i32 to vector<32x128xi32>
    %22 = arith.remsi %0, %21 : vector<32x128xi32>
    %c0_i32_7 = arith.constant 0 : i32
    %23 = vector.broadcast %c0_i32_7 : i32 to vector<32x128xi32>
    %24 = arith.cmpi ne, %22, %23 : vector<32x128xi32>
    %c0_i32_8 = arith.constant 0 : i32
    %25 = vector.broadcast %c0_i32_8 : i32 to vector<32x128xi32>
    %26 = arith.cmpi slt, %22, %25 : vector<32x128xi32>
    %c0_i32_9 = arith.constant 0 : i32
    %27 = arith.cmpi slt, %20, %c0_i32_9 : i32
    %28 = vector.broadcast %27 : i1 to vector<32x128xi1>
    %29 = vector.broadcast %28 : vector<32x128xi1> to vector<32x128xi1>
    %30 = arith.xori %26, %29 : vector<32x128xi1>
    %31 = arith.andi %30, %24 : vector<32x128xi1>
    %32 = vector.broadcast %20 : i32 to vector<32x128xi32>
    %33 = arith.addi %22, %32 : vector<32x128xi32>
    %34 = arith.select %31, %33, %22 : vector<32x128xi1>, vector<32x128xi32>
    %c15_i32 = arith.constant 15 : i32
    %35 = vector.broadcast %c15_i32 : i32 to vector<32x128xi32>
    %36 = arith.cmpi ne, %34, %35 : vector<32x128xi32>
    %c0 = arith.constant 0 : index
    %c0_10 = arith.constant 0 : index
    %37 = vector.load %arg1[%c0, %c0_10] : memref<32x64xf32, #tpu.memory_space<vmem>>, vector<32x64xf32>
    %c0_11 = arith.constant 0 : index
    %c0_12 = arith.constant 0 : index
    %c0_13 = arith.constant 0 : index
    %38 = vector.load %arg2[%c0_11, %c0_12, %c0_13] : memref<3x64x128xf32, #tpu.memory_space<vmem>>, vector<1x64x128xf32>
    %39 = vector.shape_cast %38 : vector<1x64x128xf32> to vector<64x128xf32>
    %cst = arith.constant dense<0.000000e+00> : vector<32x128xf32>
    %40 = tpu.matmul %37, %39, %cst {dimension_numbers = #tpu.dot_dimension_numbers<[1], [0], [0], [1], [0, 0, 1, 1], [], []>} : vector<32x64xf32>, vector<64x128xf32>, vector<32x128xf32> -> vector<32x128xf32>
    %c1 = arith.constant 1 : index
    %c0_14 = arith.constant 0 : index
    %c0_15 = arith.constant 0 : index
    %41 = vector.load %arg2[%c1, %c0_14, %c0_15] : memref<3x64x128xf32, #tpu.memory_space<vmem>>, vector<1x64x128xf32>
    %42 = vector.shape_cast %41 : vector<1x64x128xf32> to vector<64x128xf32>
    %cst_16 = arith.constant dense<0.000000e+00> : vector<32x128xf32>
    %43 = tpu.matmul %37, %42, %cst_16 {dimension_numbers = #tpu.dot_dimension_numbers<[1], [0], [0], [1], [0, 0, 1, 1], [], []>} : vector<32x64xf32>, vector<64x128xf32>, vector<32x128xf32> -> vector<32x128xf32>
    %c2 = arith.constant 2 : index
    %c0_17 = arith.constant 0 : index
    %c0_18 = arith.constant 0 : index
    %44 = vector.load %arg2[%c2, %c0_17, %c0_18] : memref<3x64x128xf32, #tpu.memory_space<vmem>>, vector<1x64x128xf32>
    %45 = vector.shape_cast %44 : vector<1x64x128xf32> to vector<64x128xf32>
    %cst_19 = arith.constant dense<0.000000e+00> : vector<32x128xf32>
    %46 = tpu.matmul %37, %45, %cst_19 {dimension_numbers = #tpu.dot_dimension_numbers<[1], [0], [0], [1], [0, 0, 1, 1], [], []>} : vector<32x64xf32>, vector<64x128xf32>, vector<32x128xf32> -> vector<32x128xf32>
    %c1_i32_20 = arith.constant 1 : i32
    %47 = tpu.dynamic_rotate %40 by %c1_i32_20 dim 0 : vector<32x128xf32>, i32 -> vector<32x128xf32>
    %cst_21 = arith.constant 0.000000e+00 : f32
    %48 = vector.broadcast %cst_21 : f32 to vector<32x128xf32>
    %49 = arith.select %18, %47, %48 : vector<32x128xi1>, vector<32x128xf32>
    %c31_i32 = arith.constant 31 : i32
    %50 = tpu.dynamic_rotate %46 by %c31_i32 dim 0 : vector<32x128xf32>, i32 -> vector<32x128xf32>
    %cst_22 = arith.constant 0.000000e+00 : f32
    %51 = vector.broadcast %cst_22 : f32 to vector<32x128xf32>
    %52 = arith.select %36, %50, %51 : vector<32x128xi1>, vector<32x128xf32>
    %53 = arith.addf %49, %43 : vector<32x128xf32>
    %54 = arith.addf %53, %52 : vector<32x128xf32>
    %c0_23 = arith.constant 0 : index
    %c0_24 = arith.constant 0 : index
    %55 = vector.load %arg3[%c0_23, %c0_24] : memref<1x128xf32, #tpu.memory_space<vmem>>, vector<1x128xf32>
    %56 = vector.broadcast %55 : vector<1x128xf32> to vector<32x128xf32>
    %57 = arith.addf %54, %56 : vector<32x128xf32>
    %cst_25 = arith.constant 0.000000e+00 : f32
    %58 = vector.broadcast %cst_25 : f32 to vector<32x128xf32>
    %59 = arith.maximumf %57, %58 : vector<32x128xf32>
    %c0_26 = arith.constant 0 : index
    %c0_27 = arith.constant 0 : index
    %c0_28 = arith.constant 0 : index
    %60 = vector.load %arg4[%c0_26, %c0_27, %c0_28] : memref<3x128x128xf32, #tpu.memory_space<vmem>>, vector<1x128x128xf32>
    %61 = vector.shape_cast %60 : vector<1x128x128xf32> to vector<128x128xf32>
    %cst_29 = arith.constant dense<0.000000e+00> : vector<32x128xf32>
    %62 = tpu.matmul %59, %61, %cst_29 {dimension_numbers = #tpu.dot_dimension_numbers<[1], [0], [0], [1], [0, 0, 1, 1], [], []>} : vector<32x128xf32>, vector<128x128xf32>, vector<32x128xf32> -> vector<32x128xf32>
    %c1_30 = arith.constant 1 : index
    %c0_31 = arith.constant 0 : index
    %c0_32 = arith.constant 0 : index
    %63 = vector.load %arg4[%c1_30, %c0_31, %c0_32] : memref<3x128x128xf32, #tpu.memory_space<vmem>>, vector<1x128x128xf32>
    %64 = vector.shape_cast %63 : vector<1x128x128xf32> to vector<128x128xf32>
    %cst_33 = arith.constant dense<0.000000e+00> : vector<32x128xf32>
    %65 = tpu.matmul %59, %64, %cst_33 {dimension_numbers = #tpu.dot_dimension_numbers<[1], [0], [0], [1], [0, 0, 1, 1], [], []>} : vector<32x128xf32>, vector<128x128xf32>, vector<32x128xf32> -> vector<32x128xf32>
    %c2_34 = arith.constant 2 : index
    %c0_35 = arith.constant 0 : index
    %c0_36 = arith.constant 0 : index
    %66 = vector.load %arg4[%c2_34, %c0_35, %c0_36] : memref<3x128x128xf32, #tpu.memory_space<vmem>>, vector<1x128x128xf32>
    %67 = vector.shape_cast %66 : vector<1x128x128xf32> to vector<128x128xf32>
    %cst_37 = arith.constant dense<0.000000e+00> : vector<32x128xf32>
    %68 = tpu.matmul %59, %67, %cst_37 {dimension_numbers = #tpu.dot_dimension_numbers<[1], [0], [0], [1], [0, 0, 1, 1], [], []>} : vector<32x128xf32>, vector<128x128xf32>, vector<32x128xf32> -> vector<32x128xf32>
    %c1_i32_38 = arith.constant 1 : i32
    %69 = tpu.dynamic_rotate %62 by %c1_i32_38 dim 0 : vector<32x128xf32>, i32 -> vector<32x128xf32>
    %cst_39 = arith.constant 0.000000e+00 : f32
    %70 = vector.broadcast %cst_39 : f32 to vector<32x128xf32>
    %71 = arith.select %18, %69, %70 : vector<32x128xi1>, vector<32x128xf32>
    %c31_i32_40 = arith.constant 31 : i32
    %72 = tpu.dynamic_rotate %68 by %c31_i32_40 dim 0 : vector<32x128xf32>, i32 -> vector<32x128xf32>
    %cst_41 = arith.constant 0.000000e+00 : f32
    %73 = vector.broadcast %cst_41 : f32 to vector<32x128xf32>
    %74 = arith.select %36, %72, %73 : vector<32x128xi1>, vector<32x128xf32>
    %75 = arith.addf %71, %65 : vector<32x128xf32>
    %76 = arith.addf %75, %74 : vector<32x128xf32>
    %c0_42 = arith.constant 0 : index
    %c0_43 = arith.constant 0 : index
    %77 = vector.load %arg5[%c0_42, %c0_43] : memref<1x128xf32, #tpu.memory_space<vmem>>, vector<1x128xf32>
    %78 = vector.broadcast %77 : vector<1x128xf32> to vector<32x128xf32>
    %79 = arith.addf %76, %78 : vector<32x128xf32>
    %c0_44 = arith.constant 0 : index
    %c0_45 = arith.constant 0 : index
    %80 = vector.load %arg6[%c0_44, %c0_45] : memref<32x128xf32, #tpu.memory_space<vmem>>, vector<32x128xf32>
    tpu.vector_store %arg6[%c0_44, %c0_45], %79 {strides = array<i32>} : memref<32x128xf32, #tpu.memory_space<vmem>>, vector<32x128xf32>,
    return
  }
  func.func @transform_0(%arg0: i32) -> (i32, i32) {
    %c0_i32 = arith.constant 0 : i32
    %c0_i32_0 = arith.constant 0 : i32
    return %arg0, %c0_i32 : i32, i32
  }
  func.func @transform_1(%arg0: i32) -> (i32, i32, i32) {
    %c0_i32 = arith.constant 0 : i32
    %c0_i32_0 = arith.constant 0 : i32
    %c0_i32_1 = arith.constant 0 : i32
    %c0_i32_2 = arith.constant 0 : i32
    return %c0_i32, %c0_i32_0, %c0_i32_1 : i32, i32, i32
  }
  func.func @transform_2(%arg0: i32) -> (i32, i32) {
    %c0_i32 = arith.constant 0 : i32
    %c0_i32_0 = arith.constant 0 : i32
    %c0_i32_1 = arith.constant 0 : i32
    return %c0_i32, %c0_i32_0 : i32, i32
  }
  func.func @transform_3(%arg0: i32) -> (i32, i32, i32) {
    %c0_i32 = arith.constant 0 : i32
    %c0_i32_0 = arith.constant 0 : i32
    %c0_i32_1 = arith.constant 0 : i32
    %c0_i32_2 = arith.constant 0 : i32
    return %c0_i32, %c0_i32_0, %c0_i32_1 : i32, i32, i32
  }
  func.func @transform_4(%arg0: i32) -> (i32, i32) {
    %c0_i32 = arith.constant 0 : i32
    %c0_i32_0 = arith.constant 0 : i32
    %c0_i32_1 = arith.constant 0 : i32
    return %c0_i32, %c0_i32_0 : i32, i32
  }
  func.func @transform_5(%arg0: i32) -> (i32, i32) {
    %c0_i32 = arith.constant 0 : i32
    %c0_i32_0 = arith.constant 0 : i32
    return %arg0, %c0_i32 : i32, i32
  }
}

</mosaic_0001>

<bundles_post_ra>
// kernel: tile.13
= control target key start
LH: loop header
LB: loop body
LE: loop exit
PB: predicated region body
PF: predicated region fallthrough
CT: control target
= control target key end

     0   :  { %s28_s0 = inlined_call_operand.vmem [shape: f32[8], index: 0, kind: input, shape index: {}]   ;;  %s29_s1 = inlined_call_operand.vmem [shape: f32[16,8], index: 1, kind: output, shape index: {}]  }
   0x1   :  { %v4_v0 = vld [vmem:[%s28_s0] ss:$0 sm:$0xff] }
   0x2   :  { %5 = vst [vmem:[%s29_s1] sm:$0xff] %v4_v0  ;;  %8 = vst [vmem:[%s29_s1 + $0x8] sm:$0xff] %v4_v0 }

// kernel: tile.14
= control target key start
LH: loop header
LB: loop body
LE: loop exit
PB: predicated region body
PF: predicated region fallthrough
CT: control target
= control target key end

     0   :  { %s133_s10 = smov 120   ;;  %s134_s11 = smov 104   ;;  %vm3_vm0 = vcmask 64512   ;;  %vm9_vm1 = vcmask 1048512   ;;  %vm15_vm2 = vcmask 982912   ;;  %vm21_vm3 = vcmask 917312   ;;  %s209_s0 = inlined_call_operand.vmem [shape: f32[16,8], index: 0, kind: input, shape index: {}]   ;;  %s210_s1 = inlined_call_operand.vmem [shape: f32[1,128], index: 1, kind: output, shape index: {}]  }
   0x1   :  { %v103_v0 = vld [vmem:[%s209_s0 + $0xf] sm:$0x1]   ;;  %v105_v1 = vld [vmem:[%s209_s0 + $0xd] sm:$0x1]   ;;  %v104_v2 = vld [vmem:[%s209_s0 + $0xe] sm:$0x1]  }
   0x2   :  { %7 = vrot.lane.b32.xlu0 %v103_v0, %s133_s10  ;;  %19 = vrot.lane.b32.xlu1 %v105_v1, %s134_s11  ;;  %v106_v3 = vld [vmem:[%s209_s0 + $0xc] sm:$0x1]   ;;  %s135_s16 = smov 112   ;;  %s136_s17 = smov 96   ;;  %v107_v4 = vld [vmem:[%s209_s0 + $0xb] sm:$0x1]  }
   0x3   :  { %v108_v5 = vld [vmem:[%s209_s0 + $0xa] sm:$0x1]   ;;  %v2_v6 = vld [vmem:[%s209_s0] sm:$0x1]   ;;  %s137_s24 = smov 88   ;;  %s138_s25 = smov 80  }
   0x4   :  { %4 = vst.msk [vmem:[#allocation0] sm:$0x1] %vm3_vm0, %v2_v6   ;;  %v109_v7 = vld [vmem:[%s209_s0 + $0x9] sm:$0x1]   ;;  %v110_v8 = vld [vmem:[%s209_s0 + $0x8] sm:$0x1]  }
   0x5   :  { %s139_s30 = smov 72   ;;  %s140_s2 = smov 64   ;;  %v111_v9 = vld [vmem:[%s209_s0 + $0x7] sm:$0x1]   ;;  %v112_v10 = vld [vmem:[%s209_s0 + $0x6] sm:$0x1]  }
   0x6   :  { %13 = vrot.lane.b32.xlu0 %v104_v2, %s135_s16  ;;  %25 = vrot.lane.b32.xlu1 %v106_v3, %s136_s17  ;;  %s141_s7 = smov 56   ;;  %s142_s8 = smov 48   ;;  %v113_v11 = vld [vmem:[%s209_s0 + $0x5] sm:$0x1]   ;;  %v114_v12 = vld [vmem:[%s209_s0 + $0x4] sm:$0x1]  }
   0x7   :  { %s143_s13 = smov 40   ;;  %s144_s14 = smov 32   ;;  %v115_v13 = vld [vmem:[%s209_s0 + $0x3] sm:$0x1]   ;;  %v116_v14 = vld [vmem:[%s209_s0 + $0x2] sm:$0x1]  }
   0x8   :  { %s145_s19 = smov 24   ;;  %s146_s20 = smov 16   ;;  %v117_v15 = vld [vmem:[%s209_s0 + $0x1] sm:$0x1]   ;;  %vm27_vm4 = vcmask 851712   ;;  %vm33_vm5 = vcmask 786112  }
   0x9   :  { %s147_s0 = smov 8   ;;  %vm39_vm6 = vcmask 720512   ;;  %vm45_vm7 = vcmask 654912   ;;  %vm51_vm8 = vcmask 589312   ;;  %vm57_vm9 = vcmask 523712  }
   0xa   :  { %31 = vrot.lane.b32.xlu0 %v107_v4, %s137_s24  ;;  %37 = vrot.lane.b32.xlu1 %v108_v5, %s138_s25  ;;  %vm63_vm10 = vcmask 458112   ;;  %vm69_vm11 = vcmask 392512   ;;  %vm75_vm12 = vcmask 326912   ;;  %vm81_vm13 = vcmask 261312  }
   0xb   :  { %vm87_vm14 = vcmask 195712   ;;  %vm93_vm15 = vcmask 130112  }
   0xe   :  { %43 = vrot.lane.b32.xlu0 %v109_v7, %s139_s30  ;;  %49 = vrot.lane.b32.xlu1 %v110_v8, %s140_s2 }
  0x12   :  { %55 = vrot.lane.b32.xlu0 %v111_v9, %s141_s7  ;;  %61 = vrot.lane.b32.xlu1 %v112_v10, %s142_s8 }
  0x16   :  { %67 = vrot.lane.b32.xlu0 %v113_v11, %s143_s13  ;;  %73 = vrot.lane.b32.xlu1 %v114_v12, %s144_s14 }
  0x1a   :  { %79 = vrot.lane.b32.xlu0 %v115_v13, %s145_s19  ;;  %85 = vrot.lane.b32.xlu1 %v116_v14, %s146_s20 }
  0x1e   :  { %91 = vrot.lane.b32.xlu0 %v117_v15, %s147_s0 }
  0x74   :  { %v8_v16 = vpop.permute.xlu0 %7   ;;  %v20_v17 = vpop.permute.xlu1 %19  }
  0x75   :  { %10 = vst.msk [vmem:[#allocation0] sm:$0x1] %vm9_vm1, %v8_v16  }
  0x78   :  { %v14_v18 = vpop.permute.xlu0 %13   ;;  %v26_v19 = vpop.permute.xlu1 %25  }
  0x79   :  { %16 = vst.msk [vmem:[#allocation0] sm:$0x1] %vm15_vm2, %v14_v18  }
  0x7a   :  { %22 = vst.msk [vmem:[#allocation0] sm:$0x1] %vm21_vm3, %v20_v17  }
  0x7b   :  { %28 = vst.msk [vmem:[#allocation0] sm:$0x1] %vm27_vm4, %v26_v19  }
  0x7c   :  { %v32_v20 = vpop.permute.xlu0 %31   ;;  %v38_v21 = vpop.permute.xlu1 %37  }
  0x7d   :  { %34 = vst.msk [vmem:[#allocation0] sm:$0x1] %vm33_vm5, %v32_v20  }
  0x7e   :  { %40 = vst.msk [vmem:[#allocation0] sm:$0x1] %vm39_vm6, %v38_v21  }
  0x80   :  { %v44_v22 = vpop.permute.xlu0 %43   ;;  %v50_v23 = vpop.permute.xlu1 %49  }
  0x81   :  { %46 = vst.msk [vmem:[#allocation0] sm:$0x1] %vm45_vm7, %v44_v22  }
  0x82   :  { %52 = vst.msk [vmem:[#allocation0] sm:$0x1] %vm51_vm8, %v50_v23  }
  0x84   :  { %v56_v24 = vpop.permute.xlu0 %55   ;;  %v62_v25 = vpop.permute.xlu1 %61  }
  0x85   :  { %58 = vst.msk [vmem:[#allocation0] sm:$0x1] %vm57_vm9, %v56_v24  }
  0x86   :  { %64 = vst.msk [vmem:[#allocation0] sm:$0x1] %vm63_vm10, %v62_v25  }
  0x88   :  { %v68_v26 = vpop.permute.xlu0 %67   ;;  %v74_v27 = vpop.permute.xlu1 %73  }
  0x89   :  { %70 = vst.msk [vmem:[#allocation0] sm:$0x1] %vm69_vm11, %v68_v26  }
  0x8a   :  { %76 = vst.msk [vmem:[#allocation0] sm:$0x1] %vm75_vm12, %v74_v27  }
  0x8c   :  { %v80_v28 = vpop.permute.xlu0 %79   ;;  %v86_v29 = vpop.permute.xlu1 %85  }
  0x8d   :  { %82 = vst.msk [vmem:[#allocation0] sm:$0x1] %vm81_vm13, %v80_v28  }
  0x8e   :  { %88 = vst.msk [vmem:[#allocation0] sm:$0x1] %vm87_vm14, %v86_v29  }
  0x90   :  { %v92_v30 = vpop.permute.xlu0 %91  }
  0x91   :  { %94 = vst.msk [vmem:[#allocation0] sm:$0x1] %vm93_vm15, %v92_v30  }
  0x98   :  { %v99_v31 = vld [vmem:[#allocation0] sm:$0x1] }
  0x99   :  { %102 = vst [vmem:[%s210_s1] sm:$0x1] %v99_v31 }

// kernel: block_forward.1
= control target key start
LH: loop header
LB: loop body
LE: loop exit
PB: predicated region body
PF: predicated region fallthrough
CT: control target
= control target key end

     0   :  { %vm93_vm0 = vcmask 523264   ;;  %v20_v62 = vlaneseq  ;;  %s1486_s1 = inlined_call_operand.vmem [shape: f32[3,64,128], index: 1, kind: input, shape index: {}]   ;;  %s1487_s0 = inlined_call_operand.vmem [shape: f32[32,64], index: 0, kind: input, shape index: {}]   ;;  %s1488_s3 = inlined_call_operand.vmem [shape: f32[3,128,128], index: 3, kind: input, shape index: {}]   ;;  %s1489_s2 = inlined_call_operand.vmem [shape: f32[1,128], index: 2, kind: input, shape index: {}]   ;;  %s1490_s4 = inlined_call_operand.vmem [shape: f32[1,128], index: 4, kind: input, shape index: {}]   ;;  %s1491_s5 = inlined_call_operand.vmem [shape: f32[32,128], index: 5, kind: output, shape index: {}]  }
   0x1   :  { %v92_v0 = vld [vmem:[%s1486_s1 + $0x38] sm:$0xff]  ;;  %v91_v1 = vld [vmem:[%s1486_s1 + $0x30] sm:$0xff]  ;;  %v90_v4 = vld [vmem:[%s1486_s1 + $0x28] sm:$0xff] }
   0x2   :  { %942 = vmatprep.subr.mxu0 %v92_v0  ;;  %v795_v2 = vld [vmem:[%s1486_s1 + $0x78] sm:$0xff]  ;;  %v794_v3 = vld [vmem:[%s1486_s1 + $0x70] sm:$0xff]  ;;  %v793_v5 = vld [vmem:[%s1486_s1 + $0x68] sm:$0xff] }
   0x3   :  { %943 = vmatpush3.msra.mxu0 %v92_v0  ;;  %964 = vmatprep.subr.mxu1 %v795_v2  ;;  %v89_v6 = vld [vmem:[%s1486_s1 + $0x20] sm:$0xff]  ;;  %v88_v8 = vld [vmem:[%s1486_s1 + $0x18] sm:$0xff]  ;;  %v87_v10 = vld [vmem:[%s1486_s1 + $0x10] sm:$0xff]  ;;  %v1350_v0 = vshrl.u32 %v20_v62, 7 }
   0x4   :  { %944 = vmatprep.subr.mxu0 %v91_v1  ;;  %965 = vmatpush3.msra.mxu1 %v795_v2  ;;  %v792_v7 = vld [vmem:[%s1486_s1 + $0x60] sm:$0xff]  ;;  %v791_v9 = vld [vmem:[%s1486_s1 + $0x58] sm:$0xff]  ;;  %v790_v11 = vld [vmem:[%s1486_s1 + $0x50] sm:$0xff] }
   0x5   :  { %945 = vmatpush3.msra.mxu0 %v91_v1  ;;  %966 = vmatprep.subr.mxu1 %v794_v3  ;;  %v86_v12 = vld [vmem:[%s1486_s1 + $0x8] sm:$0xff]  ;;  %v81_v13 = vld [vmem:[%s1487_s0] sm:$0xff]  ;;  %v807_v17 = vld [vmem:[%s1486_s1 + $0xb8] sm:$0xff]  ;;  %vm383_vm1 = vcmp.lt.s32.totalorder %v1350_v0, 1  ;;  %vm396_vm4 = vcmp.lt.s32.totalorder %v1350_v0, 7 }
   0x6   :  { %946 = vmatprep.subr.mxu0 %v90_v4  ;;  %967 = vmatpush3.msra.mxu1 %v794_v3  ;;  %v85_v14 = vld [vmem:[%s1486_s1] sm:$0xff]  ;;  %v789_v15 = vld [vmem:[%s1486_s1 + $0x48] sm:$0xff]  ;;  %v806_v19 = vld [vmem:[%s1486_s1 + $0xb0] sm:$0xff] }
   0x7   :  { %947 = vmatpush3.msra.mxu0 %v90_v4  ;;  %968 = vmatprep.subr.mxu1 %v793_v5  ;;  %v82_v16 = vld [vmem:[%s1487_s0 + $0x8] sm:$0xff]  ;;  %v788_v18 = vld [vmem:[%s1486_s1 + $0x40] sm:$0xff]  ;;  %v83_v20 = vld [vmem:[%s1487_s0 + $0x10] sm:$0xff]  ;;  %v29_v4 = vand.u32 15, %v1350_v0 }
   0x8   :  { %948 = vmatprep.subr.mxu0 %v89_v6  ;;  %969 = vmatpush3.msra.mxu1 %v793_v5  ;;  %v84_v21 = vld [vmem:[%s1487_s0 + $0x18] sm:$0xff]  ;;  %v805_v22 = vld [vmem:[%s1486_s1 + $0xa8] sm:$0xff]  ;;  %v804_v23 = vld [vmem:[%s1486_s1 + $0xa0] sm:$0xff]  ;;  %v23_v5 = vadd.s32 16, %v1350_v0 }
   0x9   :  { %949 = vmatpush3.msra.mxu0 %v89_v6  ;;  %970 = vmatprep.subr.mxu1 %v792_v7  ;;  %v803_v24 = vld [vmem:[%s1486_s1 + $0x98] sm:$0xff]  ;;  %v802_v25 = vld [vmem:[%s1486_s1 + $0x90] sm:$0xff]  ;;  %v801_v26 = vld [vmem:[%s1486_s1 + $0x88] sm:$0xff]  ;;  %vm1356_vm2 = vcmp.ne.s32.totalorder %v29_v4, 0 }
   0xa   :  { %950 = vmatprep.subr.mxu0 %v88_v8  ;;  %971 = vmatpush3.msra.mxu1 %v792_v7  ;;  %v800_v27 = vld [vmem:[%s1486_s1 + $0x80] sm:$0xff]  ;;  %v443_v28 = vld [vmem:[%s1488_s3 + $0x78] sm:$0xff]  ;;  %v442_v30 = vld [vmem:[%s1488_s3 + $0x70] sm:$0xff] }
   0xb   :  { %951 = vmatpush3.msra.mxu0 %v88_v8  ;;  %972 = vmatprep.subr.mxu1 %v791_v9  ;;  %v828_v29 = vld [vmem:[%s1488_s3 + $0xf8] sm:$0xff]  ;;  %v827_v31 = vld [vmem:[%s1488_s3 + $0xf0] sm:$0xff]  ;;  %v441_v32 = vld [vmem:[%s1488_s3 + $0x68] sm:$0xff] }
   0xc   :  { %952 = vmatprep.subr.mxu0 %v87_v10  ;;  %973 = vmatpush3.msra.mxu1 %v791_v9  ;;  %v826_v33 = vld [vmem:[%s1488_s3 + $0xe8] sm:$0xff]  ;;  %v440_v34 = vld [vmem:[%s1488_s3 + $0x60] sm:$0xff]  ;;  %v439_v36 = vld [vmem:[%s1488_s3 + $0x58] sm:$0xff]  ;;  %v24_v9 = vadd.s32 24, %v1350_v0 }
   0xd   :  { %953 = vmatpush3.msra.mxu0 %v87_v10  ;;  %974 = vmatprep.subr.mxu1 %v790_v11  ;;  %v825_v35 = vld [vmem:[%s1488_s3 + $0xe0] sm:$0xff]  ;;  %v824_v37 = vld [vmem:[%s1488_s3 + $0xd8] sm:$0xff]  ;;  %v438_v38 = vld [vmem:[%s1488_s3 + $0x50] sm:$0xff] }
   0xe   :  { %954 = vmatprep.subr.mxu0 %v86_v12  ;;  %958 = vmatprep.mubr.msk.f32.mxu0 %vm93_vm0, %v81_v13  ;;  %v823_v39 = vld [vmem:[%s1488_s3 + $0xd0] sm:$0xff]  ;;  %v437_v40 = vld [vmem:[%s1488_s3 + $0x48] sm:$0xff]  ;;  %v436_v42 = vld [vmem:[%s1488_s3 + $0x40] sm:$0xff] }
   0xf   :  { %955 = vmatpush3.msra.mxu0 %v86_v12  ;;  %975 = vmatpush3.msra.mxu1 %v790_v11  ;;  %v822_v41 = vld [vmem:[%s1488_s3 + $0xc8] sm:$0xff]  ;;  %v821_v43 = vld [vmem:[%s1488_s3 + $0xc0] sm:$0xff]  ;;  %v435_v44 = vld [vmem:[%s1488_s3 + $0x38] sm:$0xff] }
  0x10   :  { %956 = vmatprep.subr.mxu0 %v85_v14  ;;  %976 = vmatprep.subr.mxu1 %v789_v15  ;;  %v820_v45 = vld [vmem:[%s1488_s3 + $0xb8] sm:$0xff]  ;;  %v434_v46 = vld [vmem:[%s1488_s3 + $0x30] sm:$0xff]  ;;  %v433_v48 = vld [vmem:[%s1488_s3 + $0x28] sm:$0xff] }
  0x11   :  { %957 = vmatpush3.msra.mxu0 %v85_v14  ;;  %977 = vmatpush3.msra.mxu1 %v789_v15  ;;  %v819_v47 = vld [vmem:[%s1488_s3 + $0xb0] sm:$0xff]  ;;  %v818_v49 = vld [vmem:[%s1488_s3 + $0xa8] sm:$0xff]  ;;  %v432_v50 = vld [vmem:[%s1488_s3 + $0x20] sm:$0xff]  ;;  %v22_v14 = vadd.s32 8, %v1350_v0 }
  0x12   :  { %959 = vmatmul.mubr.msk.f32.vlgmr.msra.gmra.mxu0 %vm93_vm0, %v82_v16  ;;  %986 = vmatprep.subr.mxu0 %v807_v17  ;;  %v817_v51 = vld [vmem:[%s1488_s3 + $0xa0] sm:$0xff]  ;;  %v431_v52 = vld [vmem:[%s1488_s3 + $0x18] sm:$0xff]  ;;  %v430_v54 = vld [vmem:[%s1488_s3 + $0x10] sm:$0xff] }
  0x13   :  { %987 = vmatpush3.msra.mxu0 %v807_v17  ;;  %978 = vmatprep.subr.mxu1 %v788_v18  ;;  %v816_v53 = vld [vmem:[%s1488_s3 + $0x98] sm:$0xff]  ;;  %v815_v55 = vld [vmem:[%s1488_s3 + $0x90] sm:$0xff]  ;;  %v429_v56 = vld [vmem:[%s1488_s3 + $0x8] sm:$0xff] }
  0x14   :  { %988 = vmatprep.subr.mxu0 %v806_v19  ;;  %961 = vmatprep.mubr.msk.f32.mxu0 %vm93_vm0, %v83_v20  ;;  %v814_v57 = vld [vmem:[%s1488_s3 + $0x88] sm:$0xff]  ;;  %v428_v58 = vld [vmem:[%s1488_s3] sm:$0xff]  ;;  %v1347_v60 = vld [vmem:[%s1488_s3 + $0x178] sm:$0xff] }
  0x15   :  { %979 = vmatpush3.msra.mxu1 %v788_v18  ;;  %980 = vmatprep.mubr.msk.f32.mxu1 %vm93_vm0, %v81_v13  ;;  %v813_v59 = vld [vmem:[%s1488_s3 + $0x80] sm:$0xff]  ;;  %v835_v4 = vld [vmem:[%s1488_s3 + $0x130] sm:$0xff] }
  0x16   :  { %989 = vmatpush3.msra.mxu0 %v806_v19  ;;  %981 = vmatmul.mubr.msk.f32.vlgmr.msra.gmra.mxu1 %vm93_vm0, %v82_v16  ;;  %v50_v19 = vand.u32 15, %v24_v9  ;;  %v841_v62 = vld [vmem:[%s1488_s3 + $0x160] sm:$0xff]  ;;  %v830_v9 = vld [vmem:[%s1488_s3 + $0x108] sm:$0xff] }
  0x17   :  { %962 = vmatmul.mubr.msk.f32.gmra.mxu0 %vm93_vm0, %v84_v21  ;;  %990 = vmatprep.subr.mxu0 %v805_v22  ;;  %v845_v11 = vld [vmem:[%s1490_s4] ss:$0 sm:$0xff] }
  0x18   :  { %991 = vmatpush3.msra.mxu0 %v805_v22  ;;  %983 = vmatprep.mubr.msk.f32.mxu1 %vm93_vm0, %v83_v20  ;;  %vm1376_vm5 = vcmp.ne.s32.totalorder %v50_v19, 15 }
  0x19   :  { %992 = vmatprep.subr.mxu0 %v804_v23  ;;  %1002 = vmatprep.mubr.msk.f32.mxu0 %vm93_vm0, %v81_v13  ;;  %v43_v13 = vand.u32 15, %v23_v5  ;;  %v834_v5 = vld [vmem:[%s1488_s3 + $0x128] sm:$0xff] }
  0x1a   :  { %993 = vmatpush3.msra.mxu0 %v804_v23  ;;  %984 = vmatmul.mubr.msk.f32.gmra.mxu1 %vm93_vm0, %v84_v21 }
  0x1b   :  { %994 = vmatprep.subr.mxu0 %v803_v24  ;;  %1008 = vmatprep.subr.mxu1 %v443_v28  ;;  %vm1365_vm3 = vcmp.ne.s32.totalorder %v43_v13, 0 }
  0x1c   :  { %995 = vmatpush3.msra.mxu0 %v803_v24  ;;  %1009 = vmatpush3.msra.mxu1 %v443_v28 }
  0x1d   :  { %996 = vmatprep.subr.mxu0 %v802_v25  ;;  %1010 = vmatprep.subr.mxu1 %v442_v30 }
  0x1e   :  { %997 = vmatpush3.msra.mxu0 %v802_v25  ;;  %1011 = vmatpush3.msra.mxu1 %v442_v30  ;;  %v36_v25 = vand.u32 15, %v22_v14 }
  0x1f   :  { %998 = vmatprep.subr.mxu0 %v801_v26  ;;  %1012 = vmatprep.subr.mxu1 %v441_v32 }
  0x20   :  { %999 = vmatpush3.msra.mxu0 %v801_v26  ;;  %1013 = vmatpush3.msra.mxu1 %v441_v32  ;;  %vm1389_vm6 = vcmp.ne.s32.totalorder %v36_v25, 15 }
  0x21   :  { %1000 = vmatprep.subr.mxu0 %v800_v27  ;;  %1014 = vmatprep.subr.mxu1 %v440_v34 }
  0x22   :  { %1001 = vmatpush3.msra.mxu0 %v800_v27  ;;  %1015 = vmatpush3.msra.mxu1 %v440_v34 }
  0x23   :  { %1003 = vmatmul.mubr.msk.f32.vlgmr.msra.gmra.mxu0 %vm93_vm0, %v82_v16  ;;  %1046 = vmatprep.subr.mxu0 %v828_v29 }
  0x24   :  { %1005 = vmatprep.mubr.msk.f32.mxu0 %vm93_vm0, %v83_v20  ;;  %1047 = vmatpush3.msra.mxu0 %v828_v29 }
  0x25   :  { %1048 = vmatprep.subr.mxu0 %v827_v31  ;;  %1016 = vmatprep.subr.mxu1 %v439_v36 }
  0x26   :  { %1049 = vmatpush3.msra.mxu0 %v827_v31  ;;  %1017 = vmatpush3.msra.mxu1 %v439_v36 }
  0x27   :  { %1006 = vmatmul.mubr.msk.f32.gmra.mxu0 %vm93_vm0, %v84_v21  ;;  %1050 = vmatprep.subr.mxu0 %v826_v33 }
  0x28   :  { %1051 = vmatpush3.msra.mxu0 %v826_v33  ;;  %1018 = vmatprep.subr.mxu1 %v438_v38  ;;  %v812_v33 = vld [vmem:[%s1489_s2] ss:$0 sm:$0xff] }
  0x29   :  { %1052 = vmatprep.subr.mxu0 %v825_v35  ;;  %1019 = vmatpush3.msra.mxu1 %v438_v38 }
  0x2a   :  { %1053 = vmatpush3.msra.mxu0 %v825_v35  ;;  %1020 = vmatprep.subr.mxu1 %v437_v40 }
  0x2b   :  { %1054 = vmatprep.subr.mxu0 %v824_v37  ;;  %1021 = vmatpush3.msra.mxu1 %v437_v40 }
  0x2c   :  { %1055 = vmatpush3.msra.mxu0 %v824_v37  ;;  %1022 = vmatprep.subr.mxu1 %v436_v42 }
  0x2d   :  { %1056 = vmatprep.subr.mxu0 %v823_v39  ;;  %1023 = vmatpush3.msra.mxu1 %v436_v42 }
  0x2e   :  { %1057 = vmatpush3.msra.mxu0 %v823_v39  ;;  %1024 = vmatprep.subr.mxu1 %v435_v44 }
  0x2f   :  { %1058 = vmatprep.subr.mxu0 %v822_v41  ;;  %1025 = vmatpush3.msra.mxu1 %v435_v44 }
  0x30   :  { %1059 = vmatpush3.msra.mxu0 %v822_v41  ;;  %1026 = vmatprep.subr.mxu1 %v434_v46 }
  0x31   :  { %1060 = vmatprep.subr.mxu0 %v821_v43  ;;  %1027 = vmatpush3.msra.mxu1 %v434_v46 }
  0x32   :  { %1061 = vmatpush3.msra.mxu0 %v821_v43  ;;  %1028 = vmatprep.subr.mxu1 %v433_v48 }
  0x33   :  { %1062 = vmatprep.subr.mxu0 %v820_v45  ;;  %1029 = vmatpush3.msra.mxu1 %v433_v48 }
  0x34   :  { %1063 = vmatpush3.msra.mxu0 %v820_v45  ;;  %1030 = vmatprep.subr.mxu1 %v432_v50 }
  0x35   :  { %1064 = vmatprep.subr.mxu0 %v819_v47  ;;  %1031 = vmatpush3.msra.mxu1 %v432_v50 }
  0x36   :  { %1065 = vmatpush3.msra.mxu0 %v819_v47  ;;  %1032 = vmatprep.subr.mxu1 %v431_v52 }
  0x37   :  { %1066 = vmatprep.subr.mxu0 %v818_v49  ;;  %1033 = vmatpush3.msra.mxu1 %v431_v52 }
  0x38   :  { %1067 = vmatpush3.msra.mxu0 %v818_v49  ;;  %1034 = vmatprep.subr.mxu1 %v430_v54 }
  0x39   :  { %1068 = vmatprep.subr.mxu0 %v817_v51  ;;  %1035 = vmatpush3.msra.mxu1 %v430_v54 }
  0x3a   :  { %1069 = vmatpush3.msra.mxu0 %v817_v51  ;;  %1036 = vmatprep.subr.mxu1 %v429_v56 }
  0x3b   :  { %1070 = vmatprep.subr.mxu0 %v816_v53  ;;  %1037 = vmatpush3.msra.mxu1 %v429_v56 }
  0x3c   :  { %1071 = vmatpush3.msra.mxu0 %v816_v53  ;;  %1038 = vmatprep.subr.mxu1 %v428_v58 }
  0x3d   :  { %1072 = vmatprep.subr.mxu0 %v815_v55  ;;  %1039 = vmatpush3.msra.mxu1 %v428_v58  ;;  %v843_v58 = vld [vmem:[%s1488_s3 + $0x170] sm:$0xff] }
  0x3e   :  { %1073 = vmatpush3.msra.mxu0 %v815_v55  ;;  %1084 = vmatprep.subr.mxu1 %v1347_v60 }
  0x3f   :  { %1074 = vmatprep.subr.mxu0 %v814_v57 }
  0x40   :  { %1075 = vmatpush3.msra.mxu0 %v814_v57 }
  0x41   :  { %1076 = vmatprep.subr.mxu0 %v813_v59 }
  0x42   :  { %1077 = vmatpush3.msra.mxu0 %v813_v59  ;;  %v842_v59 = vld [vmem:[%s1488_s3 + $0x168] sm:$0xff] }
  0xd2   :  { %v960_v61 = vpop.f32.mrf.mxu0 }
  0xd3   :  { %v380_v15 = vrot.slane %v960_v61, 7 }
  0xd4   :  { %v172_v63 = vpop.f32.mrf.mxu0 }
  0xd5   :  { %v379_v7 = vrot.slane %v172_v63, 7  ;;  %v839_v63 = vld [vmem:[%s1488_s3 + $0x150] sm:$0xff] }
  0xd6   :  { %v982_v2 = vpop.f32.mrf.mxu1 }
  0xd7   :  { %v963_v1 = vpop.f32.mrf.mxu0  ;;  %v386_v34 = vsel %vm383_vm1, %v379_v7, %v380_v15 }
  0xd8   :  { %v382_v3 = vrot.slane %v963_v1, 7  ;;  %v266_v8 = vpop.f32.mrf.mxu1  ;;  %v406_v44 = vadd.f32 %v982_v2, %v386_v34  ;;  %v838_v1 = vld [vmem:[%s1488_s3 + $0x148] sm:$0xff]  ;;  %v837_v2 = vld [vmem:[%s1488_s3 + $0x140] sm:$0xff] }
  0xd9   :  { %v182_v6 = vpop.f32.mrf.mxu0 }
  0xda   :  { %v381_v10 = vrot.slane %v182_v6, 7  ;;  %v387_v12 = vsel %vm383_vm1, %v382_v3, %v379_v7  ;;  %v985_v18 = vpop.f32.mrf.mxu1  ;;  %v833_v6 = vld [vmem:[%s1488_s3 + $0x120] sm:$0xff]  ;;  %v832_v7 = vld [vmem:[%s1488_s3 + $0x118] sm:$0xff] }
  0xdb   :  { %v388_v17 = vsel %vm1356_vm2, %v387_v12, 0.0 }
  0xdc   :  { %v385_v21 = vsel %vm383_vm1, %v380_v15, %v381_v10  ;;  %v405_v26 = vadd.f32 %v388_v17, %v266_v8  ;;  %v276_v28 = vpop.f32.mrf.mxu1  ;;  %v384_v35 = vsel %vm383_vm1, %v381_v10, %v382_v3  ;;  %v836_v3 = vld [vmem:[%s1488_s3 + $0x138] sm:$0xff]  ;;  %v831_v8 = vld [vmem:[%s1488_s3 + $0x110] sm:$0xff]  ;;  %v829_v10 = vld [vmem:[%s1488_s3 + $0x100] sm:$0xff] }
  0xdd   :  { %v390_v29 = vsel %vm1365_vm3, %v385_v21, 0.0  ;;  %v408_v45 = vadd.f32 %v985_v18, %v384_v35 }
  0xde   :  { %v407_v41 = vadd.f32 %v390_v29, %v276_v28 }
  0xe3   :  { %v1004_v16 = vpop.f32.mrf.mxu0 }
  0xe4   :  { %v393_v23 = vrot.slane %v1004_v16, 1 }
  0xe5   :  { %v360_v22 = vpop.f32.mrf.mxu0 }
  0xe6   :  { %v392_v24 = vrot.slane %v360_v22, 1 }
  0xe7   :  { %v1007_v27 = vpop.f32.mrf.mxu0 }
  0xe8   :  { %v399_v30 = vsel %vm396_vm4, %v392_v24, %v393_v23  ;;  %v395_v32 = vrot.slane %v1007_v27, 1 }
  0xe9   :  { %v409_v36 = vadd.f32 %v405_v26, %v399_v30  ;;  %v370_v37 = vpop.f32.mrf.mxu0 }
  0xea   :  { %v400_v38 = vsel %vm396_vm4, %v395_v32, %v392_v24  ;;  %v394_v40 = vrot.slane %v370_v37, 1 }
  0xeb   :  { %v404_v42 = vsel %vm1376_vm5, %v400_v38, 0.0  ;;  %v420_v43 = vadd.f32 %v812_v33, %v409_v36 }
  0xec   :  { %v397_v46 = vsel %vm396_vm4, %v394_v40, %v395_v32  ;;  %v398_v47 = vsel %vm396_vm4, %v393_v23, %v394_v40  ;;  %v412_v52 = vadd.f32 %v408_v45, %v404_v42 }
  0xed   :  { %v402_v48 = vsel %vm1389_vm6, %v398_v47, 0.0  ;;  %v411_v49 = vadd.f32 %v407_v41, %v397_v46  ;;  %v424_v50 = vmax.f32 %v420_v43, 0.0 }
  0xee   :  { %v410_v51 = vadd.f32 %v406_v44, %v402_v48  ;;  %v423_v56 = vadd.f32 %v812_v33, %v412_v52 }
  0xef   :  { %1040 = vmatprep.mubr.f32.mxu1 %v424_v50  ;;  %1078 = vmatprep.mubr.f32.mxu0 %v424_v50  ;;  %v422_v53 = vadd.f32 %v812_v33, %v411_v49 }
  0xf0   :  { %v421_v54 = vadd.f32 %v812_v33, %v410_v51  ;;  %v427_v61 = vmax.f32 %v423_v56, 0.0 }
  0xf1   :  { %v426_v57 = vmax.f32 %v422_v53, 0.0 }
  0xf2   :  { %v425_v55 = vmax.f32 %v421_v54, 0.0 }
  0xf4   :  { %1041 = vmatmul.mubr.f32.vlgmr.msra.gmra.mxu1 %v425_v55  ;;  %1079 = vmatmul.mubr.f32.vlgmr.msra.gmra.mxu0 %v425_v55 }
  0xf5   :  { %1085 = vmatpush3.msra.mxu1 %v1347_v60  ;;  %1043 = vmatprep.mubr.f32.mxu1 %v426_v57  ;;  %v840_v60 = vld [vmem:[%s1488_s3 + $0x158] sm:$0xff] }
  0xf6   :  { %1081 = vmatprep.mubr.f32.mxu0 %v426_v57  ;;  %1086 = vmatprep.subr.mxu1 %v843_v58 }
  0xf7   :  { %1087 = vmatpush3.msra.mxu1 %v843_v58 }
  0xf8   :  { %1088 = vmatprep.subr.mxu1 %v842_v59  ;;  %1044 = vmatmul.mubr.f32.gmra.mxu1 %v427_v61 }
  0xf9   :  { %1082 = vmatmul.mubr.f32.gmra.mxu0 %v427_v61  ;;  %1089 = vmatpush3.msra.mxu1 %v842_v59 }
  0xfa   :  { %1090 = vmatprep.subr.mxu1 %v841_v62  ;;  %1116 = vmatprep.mubr.f32.mxu1 %v424_v50 }
  0xfb   :  { %1091 = vmatpush3.msra.mxu1 %v841_v62 }
  0xfc   :  { %1092 = vmatprep.subr.mxu1 %v840_v60 }
  0xfd   :  { %1093 = vmatpush3.msra.mxu1 %v840_v60 }
  0xfe   :  { %1094 = vmatprep.subr.mxu1 %v839_v63 }
  0xff   :  { %1095 = vmatpush3.msra.mxu1 %v839_v63 }
 0x100   :  { %1096 = vmatprep.subr.mxu1 %v838_v1 }
 0x101   :  { %1097 = vmatpush3.msra.mxu1 %v838_v1 }
 0x102   :  { %1098 = vmatprep.subr.mxu1 %v837_v2 }
 0x103   :  { %1099 = vmatpush3.msra.mxu1 %v837_v2 }
 0x104   :  { %1100 = vmatprep.subr.mxu1 %v836_v3 }
 0x105   :  { %1101 = vmatpush3.msra.mxu1 %v836_v3 }
 0x106   :  { %1102 = vmatprep.subr.mxu1 %v835_v4 }
 0x107   :  { %1103 = vmatpush3.msra.mxu1 %v835_v4 }
 0x108   :  { %1104 = vmatprep.subr.mxu1 %v834_v5 }
 0x109   :  { %1105 = vmatpush3.msra.mxu1 %v834_v5 }
 0x10a   :  { %1106 = vmatprep.subr.mxu1 %v833_v6 }
 0x10b   :  { %1107 = vmatpush3.msra.mxu1 %v833_v6 }
 0x10c   :  { %1108 = vmatprep.subr.mxu1 %v832_v7 }
 0x10d   :  { %1109 = vmatpush3.msra.mxu1 %v832_v7 }
 0x10e   :  { %1110 = vmatprep.subr.mxu1 %v831_v8 }
 0x10f   :  { %1111 = vmatpush3.msra.mxu1 %v831_v8 }
 0x110   :  { %1112 = vmatprep.subr.mxu1 %v830_v9 }
 0x111   :  { %1113 = vmatpush3.msra.mxu1 %v830_v9 }
 0x112   :  { %1114 = vmatprep.subr.mxu1 %v829_v10 }
 0x113   :  { %1115 = vmatpush3.msra.mxu1 %v829_v10 }
 0x114   :  { %1117 = vmatmul.mubr.f32.vlgmr.msra.gmra.mxu1 %v425_v55 }
 0x115   :  { %1119 = vmatprep.mubr.f32.mxu1 %v426_v57 }
 0x118   :  { %1120 = vmatmul.mubr.f32.gmra.mxu1 %v427_v61 }
 0x1b4   :  { %v1042_v12 = vpop.f32.mrf.mxu1  ;;  %v1080_v16 = vpop.f32.mrf.mxu0 }
 0x1b5   :  { %v734_v23 = vrot.slane %v1042_v12, 7 }
 0x1b6   :  { %v510_v13 = vpop.f32.mrf.mxu1  ;;  %v612_v22 = vpop.f32.mrf.mxu0 }
 0x1b7   :  { %v733_v18 = vrot.slane %v510_v13, 7 }
 0x1b8   :  { %v1045_v14 = vpop.f32.mrf.mxu1 }
 0x1b9   :  { %v736_v15 = vrot.slane %v1045_v14, 7  ;;  %v1083_v28 = vpop.f32.mrf.mxu0  ;;  %v739_v38 = vsel %vm383_vm1, %v733_v18, %v734_v23 }
 0x1ba   :  { %v520_v17 = vpop.f32.mrf.mxu1  ;;  %v758_v48 = vadd.f32 %v1080_v16, %v739_v38 }
 0x1bb   :  { %v740_v19 = vsel %vm383_vm1, %v736_v15, %v733_v18  ;;  %v735_v21 = vrot.slane %v520_v17, 7  ;;  %v622_v43 = vpop.f32.mrf.mxu0 }
 0x1bc   :  { %v741_v25 = vsel %vm1356_vm2, %v740_v19, 0.0 }
 0x1bd   :  { %v738_v26 = vsel %vm383_vm1, %v734_v23, %v735_v21  ;;  %v757_v32 = vadd.f32 %v741_v25, %v612_v22  ;;  %v737_v33 = vsel %vm383_vm1, %v735_v21, %v736_v15 }
 0x1be   :  { %v743_v35 = vsel %vm1365_vm3, %v738_v26, 0.0  ;;  %v760_v42 = vadd.f32 %v1083_v28, %v737_v33 }
 0x1bf   :  { %v759_v45 = vadd.f32 %v743_v35, %v622_v43 }
 0x1d4   :  { %v1118_v24 = vpop.f32.mrf.mxu1 }
 0x1d5   :  { %v746_v29 = vrot.slane %v1118_v24, 1 }
 0x1d6   :  { %v714_v27 = vpop.f32.mrf.mxu1 }
 0x1d7   :  { %v745_v30 = vrot.slane %v714_v27, 1 }
 0x1d8   :  { %v1121_v34 = vpop.f32.mrf.mxu1 }
 0x1d9   :  { %v751_v36 = vsel %vm396_vm4, %v745_v30, %v746_v29  ;;  %v748_v37 = vrot.slane %v1121_v34, 1 }
 0x1da   :  { %v761_v40 = vadd.f32 %v757_v32, %v751_v36  ;;  %v724_v41 = vpop.f32.mrf.mxu1 }
 0x1db   :  { %v752_v44 = vsel %vm396_vm4, %v748_v37, %v745_v30  ;;  %v747_v20 = vrot.slane %v724_v41, 1 }
 0x1dc   :  { %v772_v46 = vadd.f32 %v845_v11, %v761_v40  ;;  %v756_v47 = vsel %vm1376_vm5, %v752_v44, 0.0 }
 0x1dd   :  { %v764_v49 = vadd.f32 %v760_v42, %v756_v47  ;;  %v749_v50 = vsel %vm396_vm4, %v747_v20, %v748_v37  ;;  %v750_v51 = vsel %vm396_vm4, %v746_v29, %v747_v20 }
 0x1de   :  { %776 = vst [vmem:[%s1491_s5] sm:$0xff] %v772_v46  ;;  %v754_v52 = vsel %vm1389_vm6, %v750_v51, 0.0  ;;  %v763_v53 = vadd.f32 %v759_v45, %v749_v50 }
 0x1df   :  { %v775_v54 = vadd.f32 %v845_v11, %v764_v49  ;;  %v762_v55 = vadd.f32 %v758_v48, %v754_v52 }
 0x1e0   :  { %v774_v31 = vadd.f32 %v845_v11, %v763_v53 }
 0x1e1   :  { %779 = vst [vmem:[%s1491_s5 + $0x18] sm:$0xff] %v775_v54  ;;  %v773_v56 = vadd.f32 %v845_v11, %v762_v55 }
 0x1e2   :  { %778 = vst [vmem:[%s1491_s5 + $0x10] sm:$0xff] %v774_v31 }
 0x1e3   :  { %777 = vst [vmem:[%s1491_s5 + $0x8] sm:$0xff] %v773_v56 }

</bundles_post_ra>
